<compile_context>
chip_gen: v7x
topology: tpu7x:2x2x1
jax: 0.10.0
libtpu: 0.0.40
codegen_flags: <defaults>
</compile_context>

<pallas_src>
import jax
import jax.numpy as jnp
from jax.experimental import pallas as pl
from jax.experimental.pallas import tpu as pltpu

ALPHA = 0.25
GAMMA = 2.0          # must be 2 for the squaring fast path in the kernel
EPS = 1e-7

LANES = 128
SUBLANES = 8
MAX_BLOCK_ROWS = 1024    # (1024, 128) f32 tile = 512 KiB per slab


def _focal_loss_kernel(x0_ref, x1_ref, t_ref, o_ref):
    """One lane-dense tile: elementwise focal loss + per-lane partial sums.

    x0_ref, x1_ref, t_ref : (block_rows, 128) tiles, native dtype.
    o_ref                 : (1, 8, 128) f32 per-block lane-dense partial sums.
    """
    x0 = x0_ref[...].astype(jnp.float32)
    x1 = x1_ref[...].astype(jnp.float32)
    t = t_ref[...].astype(jnp.float32)

    # softmax over 2 classes, column 1  ==  sigmoid(x1 - x0)   (1 EUP exp)
    d = x1 - x0
    p = 1.0 / (1.0 + jnp.exp(-d))
    q = 1.0 - p

    # gamma == 2 -> plain squares (VPU); 2 EUP logs keep the module's eps terms.
    loss = (
        -ALPHA * (q * q) * (t * jnp.log(p + EPS))
        - (1.0 - ALPHA) * (p * p) * ((1.0 - t) * jnp.log(q + EPS))
    )

    block_rows = loss.shape[0]
    # Per-lane / per-sublane partial sum: grouping consecutive (8,128) vregs and
    # summing over the group axis is vreg-wise VPU adds only; the expensive
    # cross-lane reduction happens once, outside the kernel, on a tiny array.
    part = jnp.sum(loss.reshape(block_rows // SUBLANES, SUBLANES, LANES), axis=0)
    o_ref[...] = part.reshape(1, SUBLANES, LANES)


def focal_loss(logits, target, *, reduction="none", max_block_rows=MAX_BLOCK_ROWS):
    """logits: (N, 2); target: (N,) 0/1. Returns scalar focal loss (f32).

    reduction='sum' -> sum over examples; anything else (module default 'none')
    -> mean over examples, matching the PyTorch module's forward.
    """
    n, c = logits.shape
    assert c == 2, "FocalLoss kernel assumes binary (2-class) logits (p = softmax[:, 1])"

    x0 = logits[:, 0]
    x1 = logits[:, 1]
    t = jnp.reshape(target, (-1,))

    # Lane-dense layout: 128 examples per vreg row, rows padded to a multiple of 8.
    rows = pl.cdiv(n, LANES)
    rows = ((rows + SUBLANES - 1) // SUBLANES) * SUBLANES
    block_rows = min(int(max_block_rows), rows)
    block_rows = max(SUBLANES, (block_rows // SUBLANES) * SUBLANES)
    num_blocks = pl.cdiv(rows, block_rows)
    padded_rows = num_blocks * block_rows
    pad = padded_rows * LANES - n

    # Padding contributes exactly 0 loss:
    #   d = 100 -> p = sigmoid(100) == 1.0 in f32 -> (1-p)^2 == 0 kills term 1,
    #   t = 1   -> (1 - t) == 0 kills term 2.
    x0 = jnp.pad(x0, (0, pad), constant_values=0).reshape(padded_rows, LANES)
    x1 = jnp.pad(x1, (0, pad), constant_values=100).reshape(padded_rows, LANES)
    t = jnp.pad(t, (0, pad), constant_values=1).reshape(padded_rows, LANES)

    in_spec = pl.BlockSpec((block_rows, LANES), lambda i: (i, 0))
    partials = pl.pallas_call(
        _focal_loss_kernel,
        out_shape=jax.ShapeDtypeStruct((num_blocks, SUBLANES, LANES), jnp.float32),
        grid=(num_blocks,),
        in_specs=[in_spec, in_spec, in_spec],
        out_specs=pl.BlockSpec((1, SUBLANES, LANES), lambda i: (i, 0, 0)),
        compiler_params=pltpu.CompilerParams(
            dimension_semantics=("parallel",),
        ),
    )(x0, x1, t)

    total = jnp.sum(partials)
    if reduction == "sum":
        return total
    return total / n


def focal_loss_ref(logits, target, reduction="none"):
    # plain-JAX reference mirroring the PyTorch forward exactly
    pt = jax.nn.softmax(logits.astype(jnp.float32), axis=1)
    p = pt[:, 1]
    t = target.astype(jnp.float32)
    loss = (
        -ALPHA * jnp.power(1.0 - p, GAMMA) * (t * jnp.log(p + EPS))
        - (1.0 - ALPHA) * jnp.power(p, GAMMA) * ((1.0 - t) * jnp.log(1.0 - p + EPS))
    )
    if reduction == "sum":
        return jnp.sum(loss)
    return jnp.mean(loss)


if __name__ == "__main__":
    key = jax.random.PRNGKey(0)
    k1, k2, k3, k4, k5, k6 = jax.random.split(key, 6)

    # Small shapes consistent with the module: (batch, 2) logits, 0/1 float targets.
    cases = [
        (k1, k2, 8, MAX_BLOCK_ROWS, "none"),
        (k3, k4, 300, MAX_BLOCK_ROWS, "none"),
        (k5, k6, 2048, 8, "none"),   # small block_rows -> exercises multi-block grid
        (k3, k4, 300, MAX_BLOCK_ROWS, "sum"),
    ]
    for klog, ktar, n, bmax, red in cases:
        logits = jax.random.normal(klog, (n, 2), dtype=jnp.float32)
        target = (jax.random.uniform(ktar, (n,)) > 0.5).astype(jnp.float32)

        out = jax.block_until_ready(
            focal_loss(logits, target, reduction=red, max_block_rows=bmax)
        )
        ref = focal_loss_ref(logits, target, reduction=red)
        assert jnp.allclose(out, ref, rtol=1e-5, atol=1e-5), (n, red, out, ref)

    print("KERNEL_OK")
</pallas_src>

<mosaic_0001>
module attributes {stable_mosaic.version = 11 : i64} {
  func.func @_focal_loss_kernel(%arg0: i32, %arg1: memref<8x128xf32, #tpu.memory_space<vmem>>, %arg2: memref<8x128xf32, #tpu.memory_space<vmem>>, %arg3: memref<8x128xf32, #tpu.memory_space<vmem>>, %arg4: memref<1x8x128xf32, #tpu.memory_space<vmem>>) attributes {dimension_semantics = [#tpu.dimension_semantics<parallel>], iteration_bounds = array<i64: 1>, scalar_prefetch = 0 : i64, scratch_operands = 0 : i64, tpu.core_type = #tpu.core_type<tc>, window_params = [{transform_indices = @transform_0, window_bounds = array<i64: 8, 128>}, {transform_indices = @transform_1, window_bounds = array<i64: 8, 128>}, {transform_indices = @transform_2, window_bounds = array<i64: 8, 128>}, {transform_indices = @transform_3, window_bounds = array<i64: 1, 8, 128>}]} {
    %c0 = arith.constant 0 : index
    %c0_0 = arith.constant 0 : index
    %0 = vector.load %arg1[%c0, %c0_0] : memref<8x128xf32, #tpu.memory_space<vmem>>, vector<8x128xf32>
    %c0_1 = arith.constant 0 : index
    %c0_2 = arith.constant 0 : index
    %1 = vector.load %arg2[%c0_1, %c0_2] : memref<8x128xf32, #tpu.memory_space<vmem>>, vector<8x128xf32>
    %c0_3 = arith.constant 0 : index
    %c0_4 = arith.constant 0 : index
    %2 = vector.load %arg3[%c0_3, %c0_4] : memref<8x128xf32, #tpu.memory_space<vmem>>, vector<8x128xf32>
    %3 = arith.subf %1, %0 : vector<8x128xf32>
    %cst = arith.constant 0.000000e+00 : f32
    %4 = vector.broadcast %cst : f32 to vector<8x128xf32>
    %5 = arith.subf %4, %3 : vector<8x128xf32>
    %6 = math.exp %5 : vector<8x128xf32>
    %cst_5 = arith.constant 1.000000e+00 : f32
    %7 = vector.broadcast %cst_5 : f32 to vector<8x128xf32>
    %8 = arith.addf %7, %6 : vector<8x128xf32>
    %cst_6 = arith.constant 1.000000e+00 : f32
    %9 = vector.broadcast %cst_6 : f32 to vector<8x128xf32>
    %10 = arith.divf %9, %8 : vector<8x128xf32>
    %cst_7 = arith.constant 1.000000e+00 : f32
    %11 = vector.broadcast %cst_7 : f32 to vector<8x128xf32>
    %12 = arith.subf %11, %10 : vector<8x128xf32>
    %13 = arith.mulf %12, %12 : vector<8x128xf32>
    %cst_8 = arith.constant -2.500000e-01 : f32
    %14 = vector.broadcast %cst_8 : f32 to vector<8x128xf32>
    %15 = arith.mulf %14, %13 : vector<8x128xf32>
    %cst_9 = arith.constant 1.000000e-07 : f32
    %16 = vector.broadcast %cst_9 : f32 to vector<8x128xf32>
    %17 = arith.addf %10, %16 : vector<8x128xf32>
    %18 = math.log %17 : vector<8x128xf32>
    %19 = arith.mulf %2, %18 : vector<8x128xf32>
    %20 = arith.mulf %15, %19 : vector<8x128xf32>
    %21 = arith.mulf %10, %10 : vector<8x128xf32>
    %cst_10 = arith.constant 7.500000e-01 : f32
    %22 = vector.broadcast %cst_10 : f32 to vector<8x128xf32>
    %23 = arith.mulf %22, %21 : vector<8x128xf32>
    %cst_11 = arith.constant 1.000000e+00 : f32
    %24 = vector.broadcast %cst_11 : f32 to vector<8x128xf32>
    %25 = arith.subf %24, %2 : vector<8x128xf32>
    %cst_12 = arith.constant 1.000000e-07 : f32
    %26 = vector.broadcast %cst_12 : f32 to vector<8x128xf32>
    %27 = arith.addf %12, %26 : vector<8x128xf32>
    %28 = math.log %27 : vector<8x128xf32>
    %29 = arith.mulf %25, %28 : vector<8x128xf32>
    %30 = arith.mulf %23, %29 : vector<8x128xf32>
    %31 = arith.subf %20, %30 : vector<8x128xf32>
    %32 = vector.shape_cast %31 : vector<8x128xf32> to vector<1x8x128xf32>
    %cst_13 = arith.constant dense<0.000000e+00> : vector<8x128xf32>
    %33 = vector.multi_reduction <add>, %32, %cst_13 [0] : vector<1x8x128xf32> to vector<8x128xf32>
    %34 = vector.shape_cast %33 : vector<8x128xf32> to vector<1x8x128xf32>
    %c0_14 = arith.constant 0 : index
    %c0_15 = arith.constant 0 : index
    %c0_16 = arith.constant 0 : index
    %35 = vector.load %arg4[%c0_14, %c0_15, %c0_16] : memref<1x8x128xf32, #tpu.memory_space<vmem>>, vector<1x8x128xf32>
    tpu.vector_store %arg4[%c0_14, %c0_15, %c0_16], %34 {strides = array<i32>} : memref<1x8x128xf32, #tpu.memory_space<vmem>>, vector<1x8x128xf32>,
    return
  }
  func.func @transform_0(%arg0: i32) -> (i32, i32) {
    %c0_i32 = arith.constant 0 : i32
    %c0_i32_0 = arith.constant 0 : i32
    return %arg0, %c0_i32 : i32, i32
  }
  func.func @transform_1(%arg0: i32) -> (i32, i32) {
    %c0_i32 = arith.constant 0 : i32
    %c0_i32_0 = arith.constant 0 : i32
    return %arg0, %c0_i32 : i32, i32
  }
  func.func @transform_2(%arg0: i32) -> (i32, i32) {
    %c0_i32 = arith.constant 0 : i32
    %c0_i32_0 = arith.constant 0 : i32
    return %arg0, %c0_i32 : i32, i32
  }
  func.func @transform_3(%arg0: i32) -> (i32, i32, i32) {
    %c0_i32 = arith.constant 0 : i32
    %c0_i32_0 = arith.constant 0 : i32
    %c0_i32_1 = arith.constant 0 : i32
    return %arg0, %c0_i32, %c0_i32_0 : i32, i32, i32
  }
}

</mosaic_0001>

<bundles_post_ra>
// kernel: tpu_custom_call.1
= control target key start
LH: loop header
LB: loop body
LE: loop exit
PB: predicated region body
PF: predicated region fallthrough
CT: control target
= control target key end

     0   :  { %8 = vsyncpa [#allocation3], 0  ;;  %s273_s0 = inlined_call_operand.hbm [shape: f32[8,128], index: 0, kind: input, shape index: {}]   ;;  %s274_s1 = inlined_call_operand.hbm [shape: f32[8,128], index: 1, kind: input, shape index: {}]   ;;  %s275_s2 = inlined_call_operand.hbm [shape: f32[8,128], index: 2, kind: input, shape index: {}]   ;;  %s276_s3 = inlined_call_operand.hbm [shape: f32[1,8,128], index: 3, kind: output, shape index: {}]  }
   0x1   :  { %9 = vsyncpa [#allocation6], 0 }
   0x2   :  { %10 = vsyncpa [#allocation4], 0  ;;  %s201_s12 = smov [#allocation5]   ;;  %s202_s14 = smov [#allocation2]  }
   0x3   :  { %s27_s13 = sshll.u32 %s201_s12, 4  ;;  %s17_s15 = sshll.u32 %s202_s14, 4  ;;  %s28_s13 = int_to_ptr.vmem [resolvable:$true] %s27_s13  ;;  %s18_s15 = int_to_ptr.vmem [resolvable:$true] %s17_s15 }
   0x4   :  { %s107_s18 = scalar_lea.hbm %s274_s1, 128 }
   0x5   :  { %p108_p0 = scmp.ne.s32.totalorder %s274_s1, %s107_s18  ;;  %p111_p1 = scmp.lt.u32.totalorder %s107_s18, %s274_s1 }
   0x7   :  { %p113_p2 = pnand %p111_p1, %p108_p0 }
   0x9   :  { %116 = shalt.err (!%p113_p2)
}
   0xa   :  { %s117_s23 = scalar_lea.vmem %s28_s13, 128  ;;  %p122_p4 = scmp.lt.s32.totalorder %s28_s13, %s28_s13 }
   0xb   :  { %p118_p3 = scmp.ne.s32.totalorder %s28_s13, %s117_s23  ;;  %p123_p5 = scmp.lt.s32.totalorder %s117_s23, %s117_s23 }
   0xd   :  { %p124_p6 = por %p123_p5, %p122_p4 }
   0xf   :  { %p125_p7 = pnand %p124_p6, %p118_p3 }
  0x11   :  { %128 = shalt.err (!%p125_p7)
}
  0x12   :  { %30 = dma.hbm_to_vmem [thread:$0]  %s274_s1, 128, %s28_s13, [#allocation6]  }
  0x13   :  { %s129_s28 = scalar_lea.hbm %s273_s0, 128 }
  0x14   :  { %p130_p8 = scmp.ne.s32.totalorder %s273_s0, %s129_s28  ;;  %p133_p9 = scmp.lt.u32.totalorder %s129_s28, %s273_s0 }
  0x16   :  { %p135_p10 = pnand %p133_p9, %p130_p8 }
  0x18   :  { %138 = shalt.err (!%p135_p10)
}
  0x19   :  { %s139_s6 = scalar_lea.vmem %s18_s15, 128  ;;  %p144_p12 = scmp.lt.s32.totalorder %s18_s15, %s18_s15 }
  0x1a   :  { %p140_p11 = scmp.ne.s32.totalorder %s18_s15, %s139_s6  ;;  %p145_p13 = scmp.lt.s32.totalorder %s139_s6, %s139_s6 }
  0x1c   :  { %p146_p0 = por %p145_p13, %p144_p12 }
  0x1e   :  { %p147_p1 = pnand %p146_p0, %p140_p11 }
  0x20   :  { %150 = shalt.err (!%p147_p1)
}
  0x21   :  { %20 = dma.hbm_to_vmem [thread:$0]  %s273_s0, 128, %s18_s15, [#allocation3]  }
  0x22   :  { %s203_s8 = smov [#allocation7]   ;;  %s151_s12 = scalar_lea.hbm %s275_s2, 128 }
  0x23   :  { %s37_s9 = sshll.u32 %s203_s8, 4  ;;  %p152_p2 = scmp.ne.s32.totalorder %s275_s2, %s151_s12  ;;  %s38_s9 = int_to_ptr.vmem [resolvable:$true] %s37_s9 }
  0x24   :  { %p155_p3 = scmp.lt.u32.totalorder %s151_s12, %s275_s2 }
  0x26   :  { %p157_p4 = pnand %p155_p3, %p152_p2 }
  0x28   :  { %160 = shalt.err (!%p157_p4)
}
  0x29   :  { %s161_s18 = scalar_lea.vmem %s38_s9, 128  ;;  %p166_p6 = scmp.lt.s32.totalorder %s38_s9, %s38_s9 }
  0x2a   :  { %p162_p5 = scmp.ne.s32.totalorder %s38_s9, %s161_s18  ;;  %p167_p7 = scmp.lt.s32.totalorder %s161_s18, %s161_s18 }
  0x2c   :  { %p168_p8 = por %p167_p7, %p166_p6 }
  0x2e   :  { %p169_p9 = pnand %p168_p8, %p162_p5 }
  0x30   :  { %172 = shalt.err (!%p169_p9)
}
  0x31   :  { %40 = dma.hbm_to_vmem [thread:$0]  %s275_s2, 128, %s38_s9, [#allocation6]  }
  0x32   :  { %195 = dma.done.wait [#allocation3], 128  }
  0x33   :  { %196 = vsyncadd [#allocation3], 4294967168 }
  0x34   :  { %197 = dma.done.wait [#allocation6], 256  }
  0x35   :  { %198 = vsyncadd [#allocation6], 4294967040  ;;  %v50_v0 = vld [vmem:[#allocation2] sm:$0xff]  ;;  %v51_v1 = vld [vmem:[#allocation5] sm:$0xff]  ;;  %s204_s2 = smov [#allocation8]  }
  0x36   :  { %v53_v2 = vsub.f32 %v51_v1, %v50_v0  ;;  %v52_v12 = vld [vmem:[#allocation7] sm:$0xff]  ;;  %s85_s19 = sshll.u32 %s204_s2, 4  ;;  %s86_s19 = int_to_ptr.vmem [resolvable:$true] %s85_s19 }
  0x37   :  { %v70_v17 = vsub.f32 1.0, %v52_v12  ;;  %s173_s20 = scalar_lea.vmem %s86_s19, 128  ;;  %p178_p11 = scmp.lt.s32.totalorder %s86_s19, %s86_s19 }
  0x38   :  { %v54_v3 = vsub.f32 0.0, %v53_v2  ;;  %p174_p10 = scmp.ne.s32.totalorder %s86_s19, %s173_s20  ;;  %p179_p12 = scmp.lt.s32.totalorder %s173_s20, %s173_s20 }
  0x3a   :  { %v55_v4 = vmul.f32 1.442695, %v54_v3  ;;  %p180_p13 = por %p179_p12, %p178_p11 }
  0x3c   :  { %99 = vpow2.f32 %v55_v4  ;;  %p181_p0 = pnand %p180_p13, %p174_p10 }
  0x46   :  { %v100_v5 = vpop.eup %99 }
  0x47   :  { %v57_v6 = vadd.f32 1.0, %v100_v5 }
  0x49   :  { %101 = vrcp.f32 %v57_v6 }
  0x53   :  { %v102_v7 = vpop.eup %101 }
  0x54   :  { %v60_v8 = vsub.f32 1.0, %v102_v7  ;;  %v63_v9 = vadd.f32 1e-07, %v102_v7  ;;  %v68_v13 = vmul.f32 %v102_v7, %v102_v7 }
  0x56   :  { %103 = vlog2.f32 %v63_v9  ;;  %v71_v10 = vadd.f32 1e-07, %v60_v8  ;;  %v61_v11 = vmul.f32 %v60_v8, %v60_v8  ;;  %v69_v20 = vmul.f32 0.75, %v68_v13 }
  0x58   :  { %105 = vlog2.f32 %v71_v10  ;;  %v62_v15 = vmul.f32 -0.25, %v61_v11 }
  0x60   :  { %v104_v14 = vpop.eup %103 }
  0x61   :  { %v65_v16 = vmul.f32 0.6931472, %v104_v14 }
  0x62   :  { %v106_v18 = vpop.eup %105 }
  0x63   :  { %v66_v19 = vmul.f32 %v65_v16, %v52_v12  ;;  %v73_v21 = vmul.f32 0.6931472, %v106_v18 }
  0x65   :  { %v67_v22 = vmul.f32 %v66_v19, %v62_v15  ;;  %v74_v23 = vmul.f32 %v73_v21, %v70_v17 }
  0x67   :  { %v75_v24 = vmul.f32 %v74_v23, %v69_v20 }
  0x69   :  { %v76_v25 = vsub.f32 %v67_v22, %v75_v24 }
  0x6b   :  { %78 = vst [vmem:[#allocation8] sm:$0xff] %v76_v25 }
  0x6c   :  { %184 = shalt.err (!%p181_p0)
}
  0x6d   :  { %s185_s23 = scalar_lea.hbm %s276_s3, 128 }
  0x6e   :  { %p186_p1 = scmp.ne.s32.totalorder %s276_s3, %s185_s23  ;;  %p189_p2 = scmp.lt.u32.totalorder %s185_s23, %s276_s3 }
  0x70   :  { %p191_p3 = pnand %p189_p2, %p186_p1 }
  0x72   :  { %194 = shalt.err (!%p191_p3)
}
  0x73   :  { %88 = dma.vmem_to_hbm [thread:$0]  %s86_s19, 128, %s276_s3, [#allocation4]  }
  0x74   :  { %199 = dma.done.wait [#allocation4], 128  }
  0x75   :  { %200 = vsyncadd [#allocation4], 4294967168 }
  0x76   :  { %92 = vsyncpa [#allocation3], 1 }
  0x77   :  { %93 = vsyncpa [#allocation6], 1 }
  0x78   :  { %94 = vsyncpa [#allocation4], 1 }

</bundles_post_ra>
